<compile_context>
chip_gen: v6e
topology: v6e:2x2x1
jax: 0.10.0
libtpu: 0.0.40
codegen_flags: <defaults>
</compile_context>

<pallas_src>
import functools

import jax
import jax.numpy as jnp
from jax.experimental import pallas as pl

EPS = 1e-5
LANE = 128


def _round_up(n, m):
    return (n + m - 1) // m * m


def resnet_block_kernel(x_ref, w1_ref, w2_ref, w3_ref, vec_ref, o_ref, *,
                        inv_b, hpad, opad):
    """Single-block fused forward.  x_ref f32, w*_ref bf16, vec_ref packed f32."""
    x = x_ref[...]                       # (B, Ipad) f32
    vec = vec_ref[...]                   # (8, P) f32: b1,g1,be1,b2,g2,be2,b3,0
    b1, g1, be1 = vec[0:1, :hpad], vec[1:2, :hpad], vec[2:3, :hpad]
    b2, g2, be2 = vec[3:4, :hpad], vec[4:5, :hpad], vec[5:6, :hpad]
    b3 = vec[6:7, :opad]

    def batchnorm(h, g, be):
        # One-pass stats, then a fused scale/shift (2 VPU ops per element).
        mean = jnp.sum(h, axis=0, keepdims=True) * inv_b
        mean_sq = jnp.sum(h * h, axis=0, keepdims=True) * inv_b
        var = jnp.maximum(mean_sq - mean * mean, 0.0)
        scale = g * jax.lax.rsqrt(var + EPS)          # rsqrt -> EUP slot
        shift = be - mean * scale
        return h * scale + shift

    # ---- fc1 + ReLU + BN1 (bf16 MXU operands, f32 accumulate) --------------
    h = jnp.dot(x.astype(jnp.bfloat16), w1_ref[...],
                preferred_element_type=jnp.float32) + b1
    h = batchnorm(jnp.maximum(h, 0.0), g1, be1)

    # ---- residual: h + ReLU(fc2(h)), then BN2 ------------------------------
    h2 = jnp.dot(h.astype(jnp.bfloat16), w2_ref[...],
                 preferred_element_type=jnp.float32) + b2
    h = batchnorm(h + jnp.maximum(h2, 0.0), g2, be2)

    # ---- fc3 ----------------------------------------------------------------
    out = jnp.dot(h.astype(jnp.bfloat16), w3_ref[...],
                  preferred_element_type=jnp.float32) + b3
    o_ref[...] = out.astype(o_ref.dtype)


def resnet_block(x, params):
    """x: (B, input_dim) f32 -> (B, output_dim) f32 (training-mode BN)."""
    (w1, b1, g1, be1, w2, b2, g2, be2, w3, b3) = params
    B, in_dim = x.shape
    hid = w1.shape[1]
    out_dim = w3.shape[1]

    ipad = _round_up(in_dim, LANE)
    hpad = _round_up(hid, LANE)
    opad = _round_up(out_dim, LANE)
    p = max(hpad, opad)

    # Zero-pad + bf16-cast weights (halves DMA bytes, bf16-native MXU).
    def pad_w(w, rows, cols):
        return jnp.pad(w, ((0, rows - w.shape[0]),
                           (0, cols - w.shape[1]))).astype(jnp.bfloat16)

    w1p = pad_w(w1, ipad, hpad)
    w2p = pad_w(w2, hpad, hpad)
    w3p = pad_w(w3, hpad, opad)
    xp = jnp.pad(x, ((0, 0), (0, ipad - in_dim)))

    def pad_v(v, fill=0.0):
        v = jnp.asarray(v, jnp.float32).reshape(1, -1)
        return jnp.pad(v, ((0, 0), (0, p - v.shape[1])), constant_values=fill)

    # Pack the 7 per-feature vectors into one (8, P) block.
    vec = jnp.concatenate([
        pad_v(b1), pad_v(g1, 1.0), pad_v(be1),
        pad_v(b2), pad_v(g2, 1.0), pad_v(be2),
        pad_v(b3), jnp.zeros((1, p), jnp.float32),
    ], axis=0)

    kernel = functools.partial(resnet_block_kernel,
                               inv_b=1.0 / B, hpad=hpad, opad=opad)

    flops = 2 * B * (ipad * hpad + hpad * hpad + hpad * opad) + 12 * B * hpad
    bytes_accessed = ((xp.size + B * opad + vec.size) * 4
                      + (w1p.size + w2p.size + w3p.size) * 2)

    full = lambda a: pl.BlockSpec(a.shape, lambda: (0,) * a.ndim)

    out = pl.pallas_call(
        kernel,
        out_shape=jax.ShapeDtypeStruct((B, opad), jnp.float32),
        in_specs=[full(xp), full(w1p), full(w2p), full(w3p), full(vec)],
        out_specs=pl.BlockSpec((B, opad), lambda: (0, 0)),
        cost_estimate=pl.CostEstimate(flops=flops,
                                      transcendentals=2 * hpad,
                                      bytes_accessed=bytes_accessed),
    )(xp, w1p, w2p, w3p, vec)

    return out[:, :out_dim]


def init_params(key, input_dim, output_dim, hidden_dim):
    """Deterministic synthetic params; Linear weights stored (in, out)."""
    ks = jax.random.split(key, 6)
    w1 = jax.random.normal(ks[0], (input_dim, hidden_dim), jnp.float32) * 0.1
    b1 = jax.random.normal(ks[1], (hidden_dim,), jnp.float32) * 0.05
    w2 = jax.random.normal(ks[2], (hidden_dim, hidden_dim), jnp.float32) * 0.1
    b2 = jax.random.normal(ks[3], (hidden_dim,), jnp.float32) * 0.05
    w3 = jax.random.normal(ks[4], (hidden_dim, output_dim), jnp.float32) * 0.1
    b3 = jax.random.normal(ks[5], (output_dim,), jnp.float32) * 0.05
    g1 = jnp.ones((hidden_dim,), jnp.float32)
    be1 = jnp.zeros((hidden_dim,), jnp.float32)
    g2 = jnp.ones((hidden_dim,), jnp.float32)
    be2 = jnp.zeros((hidden_dim,), jnp.float32)
    return (w1, b1, g1, be1, w2, b2, g2, be2, w3, b3)


def reference_matched(x, params):
    """Pure-JAX reference mirroring the kernel numerics (bf16 MXU operands,
    f32 accumulation, one-pass variance) — tight plumbing check."""
    (w1, b1, g1, be1, w2, b2, g2, be2, w3, b3) = params

    def dot(a, w):
        return jnp.dot(a.astype(jnp.bfloat16), w.astype(jnp.bfloat16),
                       preferred_element_type=jnp.float32)

    def bn(h, g, be):
        mean = h.mean(0, keepdims=True)
        var = jnp.maximum((h * h).mean(0, keepdims=True) - mean * mean, 0.0)
        scale = g * jax.lax.rsqrt(var + EPS)
        return h * scale + (be - mean * scale)

    h = bn(jnp.maximum(dot(x, w1) + b1, 0.0), g1, be1)
    h = bn(h + jnp.maximum(dot(h, w2) + b2, 0.0), g2, be2)
    return dot(h, w3) + b3


def reference_f32(x, params):
    """Pure-f32 reference of the original PyTorch module semantics."""
    (w1, b1, g1, be1, w2, b2, g2, be2, w3, b3) = params

    def bn(h, g, be):
        m = h.mean(0, keepdims=True)
        v = ((h - m) ** 2).mean(0, keepdims=True)
        return (h - m) * jax.lax.rsqrt(v + EPS) * g + be

    h = bn(jnp.maximum(x @ w1 + b1, 0.0), g1, be1)
    h = bn(h + jnp.maximum(h @ w2 + b2, 0.0), g2, be2)
    return h @ w3 + b3


if __name__ == "__main__":
    B, input_dim, hidden_dim, output_dim = 8, 16, 32, 16
    key = jax.random.PRNGKey(0)
    kx, kp = jax.random.split(key)
    x = jax.random.normal(kx, (B, input_dim), jnp.float32)
    params = init_params(kp, input_dim, output_dim, hidden_dim)

    out = jax.block_until_ready(resnet_block(x, params))
    assert out.shape == (B, output_dim)

    # Tight check vs a reference that mirrors the kernel's bf16-MXU numerics.
    ref_m = reference_matched(x, params)
    assert jnp.allclose(out, ref_m, atol=1e-3, rtol=1e-3), "mismatch vs matched ref"

    # Loose check vs the full-f32 module semantics (bf16 operand rounding only).
    ref_f = reference_f32(x, params)
    assert jnp.allclose(out, ref_f, atol=1e-1, rtol=1e-1), "mismatch vs f32 ref"

    print("KERNEL_OK")
</pallas_src>

<mosaic_0001>
module attributes {stable_mosaic.version = 11 : i64} {
  func.func @resnet_block_kernel(%arg0: memref<8x128xf32, #tpu.memory_space<vmem>>, %arg1: memref<128x128xbf16, #tpu.memory_space<vmem>>, %arg2: memref<128x128xbf16, #tpu.memory_space<vmem>>, %arg3: memref<128x128xbf16, #tpu.memory_space<vmem>>, %arg4: memref<8x128xf32, #tpu.memory_space<vmem>>, %arg5: memref<8x128xf32, #tpu.memory_space<vmem>>) attributes {dimension_semantics = [], scalar_prefetch = 0 : i64, scratch_operands = 0 : i64, tpu.core_type = #tpu.core_type<tc>} {
    %c0 = arith.constant 0 : index
    %c0_0 = arith.constant 0 : index
    %0 = vector.load %arg0[%c0, %c0_0] : memref<8x128xf32, #tpu.memory_space<vmem>>, vector<8x128xf32>
    %c0_1 = arith.constant 0 : index
    %c0_2 = arith.constant 0 : index
    %1 = vector.load %arg4[%c0_1, %c0_2] : memref<8x128xf32, #tpu.memory_space<vmem>>, vector<8x128xf32>
    %2 = vector.extract_strided_slice %1 {offsets = [0, 0], sizes = [1, 128], strides = [1, 1]} : vector<8x128xf32> to vector<1x128xf32>
    %3 = vector.extract_strided_slice %1 {offsets = [1, 0], sizes = [1, 128], strides = [1, 1]} : vector<8x128xf32> to vector<1x128xf32>
    %4 = vector.extract_strided_slice %1 {offsets = [2, 0], sizes = [1, 128], strides = [1, 1]} : vector<8x128xf32> to vector<1x128xf32>
    %5 = vector.extract_strided_slice %1 {offsets = [3, 0], sizes = [1, 128], strides = [1, 1]} : vector<8x128xf32> to vector<1x128xf32>
    %6 = vector.extract_strided_slice %1 {offsets = [4, 0], sizes = [1, 128], strides = [1, 1]} : vector<8x128xf32> to vector<1x128xf32>
    %7 = vector.extract_strided_slice %1 {offsets = [5, 0], sizes = [1, 128], strides = [1, 1]} : vector<8x128xf32> to vector<1x128xf32>
    %8 = vector.extract_strided_slice %1 {offsets = [6, 0], sizes = [1, 128], strides = [1, 1]} : vector<8x128xf32> to vector<1x128xf32>
    %9 = arith.truncf %0 : vector<8x128xf32> to vector<8x128xbf16>
    %c0_3 = arith.constant 0 : index
    %c0_4 = arith.constant 0 : index
    %10 = vector.load %arg1[%c0_3, %c0_4] : memref<128x128xbf16, #tpu.memory_space<vmem>>, vector<128x128xbf16>
    %cst = arith.constant dense<0.000000e+00> : vector<8x128xf32>
    %11 = tpu.matmul %9, %10, %cst {dimension_numbers = #tpu.dot_dimension_numbers<[1], [0], [0], [1], [0, 0, 1, 1], [], []>} : vector<8x128xbf16>, vector<128x128xbf16>, vector<8x128xf32> -> vector<8x128xf32>
    %12 = vector.broadcast %2 : vector<1x128xf32> to vector<8x128xf32>
    %13 = arith.addf %11, %12 : vector<8x128xf32>
    %cst_5 = arith.constant 0.000000e+00 : f32
    %14 = vector.broadcast %cst_5 : f32 to vector<8x128xf32>
    %15 = arith.maximumf %13, %14 : vector<8x128xf32>
    %cst_6 = arith.constant dense<0.000000e+00> : vector<128xf32>
    %16 = vector.multi_reduction <add>, %15, %cst_6 [0] : vector<8x128xf32> to vector<128xf32>
    %17 = vector.shape_cast %16 : vector<128xf32> to vector<1x128xf32>
    %cst_7 = arith.constant 1.250000e-01 : f32
    %18 = vector.broadcast %cst_7 : f32 to vector<1x128xf32>
    %19 = arith.mulf %17, %18 : vector<1x128xf32>
    %20 = arith.mulf %15, %15 : vector<8x128xf32>
    %cst_8 = arith.constant dense<0.000000e+00> : vector<128xf32>
    %21 = vector.multi_reduction <add>, %20, %cst_8 [0] : vector<8x128xf32> to vector<128xf32>
    %22 = vector.shape_cast %21 : vector<128xf32> to vector<1x128xf32>
    %cst_9 = arith.constant 1.250000e-01 : f32
    %23 = vector.broadcast %cst_9 : f32 to vector<1x128xf32>
    %24 = arith.mulf %22, %23 : vector<1x128xf32>
    %25 = arith.mulf %19, %19 : vector<1x128xf32>
    %26 = arith.subf %24, %25 : vector<1x128xf32>
    %cst_10 = arith.constant 0.000000e+00 : f32
    %27 = vector.broadcast %cst_10 : f32 to vector<1x128xf32>
    %28 = arith.maximumf %26, %27 : vector<1x128xf32>
    %cst_11 = arith.constant 9.99999974E-6 : f32
    %29 = vector.broadcast %cst_11 : f32 to vector<1x128xf32>
    %30 = arith.addf %28, %29 : vector<1x128xf32>
    %31 = math.rsqrt %30 : vector<1x128xf32>
    %32 = arith.mulf %3, %31 : vector<1x128xf32>
    %33 = arith.mulf %19, %32 : vector<1x128xf32>
    %34 = arith.subf %4, %33 : vector<1x128xf32>
    %35 = vector.broadcast %32 : vector<1x128xf32> to vector<8x128xf32>
    %36 = arith.mulf %15, %35 : vector<8x128xf32>
    %37 = vector.broadcast %34 : vector<1x128xf32> to vector<8x128xf32>
    %38 = arith.addf %36, %37 : vector<8x128xf32>
    %39 = arith.truncf %38 : vector<8x128xf32> to vector<8x128xbf16>
    %c0_12 = arith.constant 0 : index
    %c0_13 = arith.constant 0 : index
    %40 = vector.load %arg2[%c0_12, %c0_13] : memref<128x128xbf16, #tpu.memory_space<vmem>>, vector<128x128xbf16>
    %cst_14 = arith.constant dense<0.000000e+00> : vector<8x128xf32>
    %41 = tpu.matmul %39, %40, %cst_14 {dimension_numbers = #tpu.dot_dimension_numbers<[1], [0], [0], [1], [0, 0, 1, 1], [], []>} : vector<8x128xbf16>, vector<128x128xbf16>, vector<8x128xf32> -> vector<8x128xf32>
    %42 = vector.broadcast %5 : vector<1x128xf32> to vector<8x128xf32>
    %43 = arith.addf %41, %42 : vector<8x128xf32>
    %cst_15 = arith.constant 0.000000e+00 : f32
    %44 = vector.broadcast %cst_15 : f32 to vector<8x128xf32>
    %45 = arith.maximumf %43, %44 : vector<8x128xf32>
    %46 = arith.addf %38, %45 : vector<8x128xf32>
    %cst_16 = arith.constant dense<0.000000e+00> : vector<128xf32>
    %47 = vector.multi_reduction <add>, %46, %cst_16 [0] : vector<8x128xf32> to vector<128xf32>
    %48 = vector.shape_cast %47 : vector<128xf32> to vector<1x128xf32>
    %cst_17 = arith.constant 1.250000e-01 : f32
    %49 = vector.broadcast %cst_17 : f32 to vector<1x128xf32>
    %50 = arith.mulf %48, %49 : vector<1x128xf32>
    %51 = arith.mulf %46, %46 : vector<8x128xf32>
    %cst_18 = arith.constant dense<0.000000e+00> : vector<128xf32>
    %52 = vector.multi_reduction <add>, %51, %cst_18 [0] : vector<8x128xf32> to vector<128xf32>
    %53 = vector.shape_cast %52 : vector<128xf32> to vector<1x128xf32>
    %cst_19 = arith.constant 1.250000e-01 : f32
    %54 = vector.broadcast %cst_19 : f32 to vector<1x128xf32>
    %55 = arith.mulf %53, %54 : vector<1x128xf32>
    %56 = arith.mulf %50, %50 : vector<1x128xf32>
    %57 = arith.subf %55, %56 : vector<1x128xf32>
    %cst_20 = arith.constant 0.000000e+00 : f32
    %58 = vector.broadcast %cst_20 : f32 to vector<1x128xf32>
    %59 = arith.maximumf %57, %58 : vector<1x128xf32>
    %cst_21 = arith.constant 9.99999974E-6 : f32
    %60 = vector.broadcast %cst_21 : f32 to vector<1x128xf32>
    %61 = arith.addf %59, %60 : vector<1x128xf32>
    %62 = math.rsqrt %61 : vector<1x128xf32>
    %63 = arith.mulf %6, %62 : vector<1x128xf32>
    %64 = arith.mulf %50, %63 : vector<1x128xf32>
    %65 = arith.subf %7, %64 : vector<1x128xf32>
    %66 = vector.broadcast %63 : vector<1x128xf32> to vector<8x128xf32>
    %67 = arith.mulf %46, %66 : vector<8x128xf32>
    %68 = vector.broadcast %65 : vector<1x128xf32> to vector<8x128xf32>
    %69 = arith.addf %67, %68 : vector<8x128xf32>
    %70 = arith.truncf %69 : vector<8x128xf32> to vector<8x128xbf16>
    %c0_22 = arith.constant 0 : index
    %c0_23 = arith.constant 0 : index
    %71 = vector.load %arg3[%c0_22, %c0_23] : memref<128x128xbf16, #tpu.memory_space<vmem>>, vector<128x128xbf16>
    %cst_24 = arith.constant dense<0.000000e+00> : vector<8x128xf32>
    %72 = tpu.matmul %70, %71, %cst_24 {dimension_numbers = #tpu.dot_dimension_numbers<[1], [0], [0], [1], [0, 0, 1, 1], [], []>} : vector<8x128xbf16>, vector<128x128xbf16>, vector<8x128xf32> -> vector<8x128xf32>
    %73 = vector.broadcast %8 : vector<1x128xf32> to vector<8x128xf32>
    %74 = arith.addf %72, %73 : vector<8x128xf32>
    %c0_25 = arith.constant 0 : index
    %c0_26 = arith.constant 0 : index
    %75 = vector.load %arg5[%c0_25, %c0_26] : memref<8x128xf32, #tpu.memory_space<vmem>>, vector<8x128xf32>
    tpu.vector_store %arg5[%c0_25, %c0_26], %74 {strides = array<i32>} : memref<8x128xf32, #tpu.memory_space<vmem>>, vector<8x128xf32>,
    return
  }
}

</mosaic_0001>

<bundles_post_ra>
// kernel: tpu_custom_call.1
= control target key start
LH: loop header
LB: loop body
LE: loop exit
PB: predicated region body
PF: predicated region fallthrough
CT: control target
= control target key end

     0   :  { %10 = vsyncpa [#allocation3], 0  ;;  %s900_s0 = inlined_call_operand.hbm [shape: f32[8,128], index: 0, kind: input, shape index: {}]   ;;  %s901_s1 = inlined_call_operand.hbm [shape: bf16[128,128], index: 1, kind: input, shape index: {}]   ;;  %s902_s2 = inlined_call_operand.hbm [shape: bf16[128,128], index: 2, kind: input, shape index: {}]   ;;  %s903_s3 = inlined_call_operand.hbm [shape: bf16[128,128], index: 3, kind: input, shape index: {}]   ;;  %s904_s4 = inlined_call_operand.hbm [shape: f32[8,128], index: 4, kind: input, shape index: {}]   ;;  %s905_s5 = inlined_call_operand.hbm [shape: f32[8,128], index: 5, kind: output, shape index: {}]  }
   0x1   :  { %11 = vsyncpa [#allocation6], 0 }
   0x2   :  { %12 = vsyncpa [#allocation9], 0 }
   0x3   :  { %13 = vsyncpa [#allocation4], 0  ;;  %s785_s18 = smov [#allocation5]  }
   0x4   :  { %s29_s19 = sshll.u32 %s785_s18, 4  ;;  %s30_s19 = int_to_ptr.vmem [resolvable:$true] %s29_s19 }
   0x5   :  { %s665_s20 = scalar_lea.vmem %s30_s19, 1024  ;;  %p670_p1 = scmp.lt.s32.totalorder %s30_s19, %s30_s19 }
   0x6   :  { %p666_p0 = scmp.ne.s32.totalorder %s30_s19, %s665_s20  ;;  %p671_p2 = scmp.lt.s32.totalorder %s665_s20, %s665_s20 }
   0x8   :  { %p672_p3 = por %p671_p2, %p670_p1 }
   0xa   :  { %p673_p4 = pnand %p672_p3, %p666_p0 }
   0xc   :  { %676 = shalt.err (!%p673_p4)
}
   0xd   :  { %s786_s21 = smov 64   ;;  %s787_s22 = smov 4  }
   0xe   :  { %35 = dma.hbm_to_vmem [thread:$0]  %s901_s1, 1024, %s30_s19, [#allocation6], %s786_s21, %s786_s21, %s787_s22  }
   0xf   :  { %s788_s25 = smov [#allocation8]   ;;  %s789_s27 = smov [#allocation2]  }
  0x10   :  { %s53_s26 = sshll.u32 %s788_s25, 4  ;;  %s20_s28 = sshll.u32 %s789_s27, 4  ;;  %s54_s26 = int_to_ptr.vmem [resolvable:$true] %s53_s26  ;;  %s21_s28 = int_to_ptr.vmem [resolvable:$true] %s20_s28 }
  0x11   :  { %s685_s29 = scalar_lea.vmem %s54_s26, 1024  ;;  %p690_p6 = scmp.lt.s32.totalorder %s54_s26, %s54_s26 }
  0x12   :  { %p686_p5 = scmp.ne.s32.totalorder %s54_s26, %s685_s29  ;;  %p691_p7 = scmp.lt.s32.totalorder %s685_s29, %s685_s29 }
  0x14   :  { %p692_p8 = por %p691_p7, %p690_p6 }
  0x16   :  { %p693_p9 = pnand %p692_p8, %p686_p5 }
  0x18   :  { %696 = shalt.err (!%p693_p9)
}
  0x19   :  { %59 = dma.hbm_to_vmem [thread:$0]  %s903_s3, 1024, %s54_s26, [#allocation9], %s786_s21, %s786_s21, %s787_s22  }
  0x1a   :  { %s705_s1 = scalar_lea.vmem %s21_s28, 128  ;;  %p710_p11 = scmp.lt.s32.totalorder %s21_s28, %s21_s28 }
  0x1b   :  { %p706_p10 = scmp.ne.s32.totalorder %s21_s28, %s705_s1  ;;  %p711_p12 = scmp.lt.s32.totalorder %s705_s1, %s705_s1 }
  0x1d   :  { %p712_p13 = por %p711_p12, %p710_p11 }
  0x1f   :  { %p713_p0 = pnand %p712_p13, %p706_p10 }
  0x21   :  { %716 = shalt.err (!%p713_p0)
}
  0x22   :  { %23 = dma.hbm_to_vmem [thread:$0]  %s900_s0, 128, %s21_s28, [#allocation3]  }
  0x23   :  { %s790_s9 = smov [#allocation7]   ;;  %s791_s11 = smov [#allocation10]  }
  0x24   :  { %s41_s10 = sshll.u32 %s790_s9, 4  ;;  %s66_s12 = sshll.u32 %s791_s11, 4  ;;  %s42_s10 = int_to_ptr.vmem [resolvable:$true] %s41_s10  ;;  %s67_s12 = int_to_ptr.vmem [resolvable:$true] %s66_s12 }
  0x25   :  { %s725_s13 = scalar_lea.vmem %s42_s10, 1024  ;;  %p730_p2 = scmp.lt.s32.totalorder %s42_s10, %s42_s10 }
  0x26   :  { %p726_p1 = scmp.ne.s32.totalorder %s42_s10, %s725_s13  ;;  %p731_p3 = scmp.lt.s32.totalorder %s725_s13, %s725_s13 }
  0x28   :  { %p732_p4 = por %p731_p3, %p730_p2 }
  0x2a   :  { %p733_p5 = pnand %p732_p4, %p726_p1 }
  0x2c   :  { %736 = shalt.err (!%p733_p5)
}
  0x2d   :  { %47 = dma.hbm_to_vmem [thread:$0]  %s902_s2, 1024, %s42_s10, [#allocation6], %s786_s21, %s786_s21, %s787_s22  }
  0x2e   :  { %s745_s0 = scalar_lea.vmem %s67_s12, 128  ;;  %p750_p7 = scmp.lt.s32.totalorder %s67_s12, %s67_s12 }
  0x2f   :  { %p746_p6 = scmp.ne.s32.totalorder %s67_s12, %s745_s0  ;;  %p751_p8 = scmp.lt.s32.totalorder %s745_s0, %s745_s0 }
  0x31   :  { %p752_p9 = por %p751_p8, %p750_p7 }
  0x33   :  { %p753_p10 = pnand %p752_p9, %p746_p6 }
  0x35   :  { %756 = shalt.err (!%p753_p10)
}
  0x36   :  { %69 = dma.hbm_to_vmem [thread:$0]  %s904_s4, 128, %s67_s12, [#allocation9]  }
  0x37   :  { %777 = dma.done.wait [#allocation3], 128  }
  0x38   :  { %778 = vsyncadd [#allocation3], 4294967168 }
  0x39   :  { %779 = dma.done.wait [#allocation6], 2048  }
  0x3a   :  { %780 = vsyncadd [#allocation6], 4294965248 }
  0x3b   :  { %781 = dma.done.wait [#allocation9], 1152  }
  0x3c   :  { %782 = vsyncadd [#allocation9], 4294966144  ;;  %v792_v0 = vmov 0.0   ;;  %vm793_vm0 = vmmov 0   ;;  %v629_v1 = vld [vmem:[#allocation5 + $0x38] sm:$0xff]   ;;  %v630_v2 = vld [vmem:[#allocation5 + $0x30] sm:$0xff]   ;;  %v105_v19 = vlaneseq }
  0x3d   :  { %559 = vmatprep.subr.bf16.mxu0 %v792_v0  ;;  %575 = vmatprep.mubr.msk.bf16.mxu0 %vm793_vm0, %v792_v0  ;;  %v631_v3 = vld [vmem:[#allocation5 + $0x28] sm:$0xff]   ;;  %v632_v4 = vld [vmem:[#allocation5 + $0x20] sm:$0xff]   ;;  %v633_v5 = vld [vmem:[#allocation5 + $0x18] sm:$0xff]   ;;  %s794_s2 = smov [#allocation11]  }
  0x3e   :  { %579 = vmatprep.subr.bf16.mxu1 %v792_v0  ;;  %595 = vmatprep.mubr.msk.bf16.mxu1 %vm793_vm0, %v792_v0  ;;  %v634_v6 = vld [vmem:[#allocation5 + $0x10] sm:$0xff]   ;;  %v635_v7 = vld [vmem:[#allocation5 + $0x8] sm:$0xff]   ;;  %v636_v8 = vld [vmem:[#allocation5] sm:$0xff]   ;;  %v872_v20 = vshrl.u32 %v105_v19, 7  ;;  %s497_s4 = sshll.u32 %s794_s2, 4  ;;  %s498_s4 = int_to_ptr.vmem [resolvable:$true] %s497_s4 }
  0x3f   :  { %560 = vmatpush3.bf16.msra.mxu0 %v629_v1  ;;  %v86_v9 = vld [vmem:[#allocation2] sm:$0xff]  ;;  %v638_v12 = vld [vmem:[#allocation7 + $0x30] sm:$0xff]   ;;  %v639_v13 = vld [vmem:[#allocation7 + $0x28] sm:$0xff]   ;;  %s757_s17 = scalar_lea.vmem %s498_s4, 128  ;;  %p762_p12 = scmp.lt.s32.totalorder %s498_s4, %s498_s4 }
  0x40   :  { %561 = vmatprep.subr.bf16.mxu0 %v792_v0  ;;  %v88_v10 = vpack.c.bf16 %v86_v9, %v86_v9  ;;  %v637_v11 = vld [vmem:[#allocation7 + $0x38] sm:$0xff]   ;;  %v640_v14 = vld [vmem:[#allocation7 + $0x20] sm:$0xff]   ;;  %v642_v16 = vld [vmem:[#allocation7 + $0x10] sm:$0xff]   ;;  %v107_v21 = vsub.s32 0, %v872_v20  ;;  %v226_v51 = vsub.s32 1, %v872_v20  ;;  %v231_v55 = vsub.s32 2, %v872_v20  ;;  %p758_p11 = scmp.ne.s32.totalorder %s498_s4, %s757_s17  ;;  %p763_p13 = scmp.lt.s32.totalorder %s757_s17, %s757_s17 }
  0x41   :  { %580 = vmatpush3.bf16.msra.mxu1 %v637_v11  ;;  %v641_v15 = vld [vmem:[#allocation7 + $0x18] sm:$0xff]   ;;  %v643_v17 = vld [vmem:[#allocation7 + $0x8] sm:$0xff]   ;;  %v644_v18 = vld [vmem:[#allocation7] sm:$0xff]  }
  0x42   :  { %581 = vmatprep.subr.bf16.mxu1 %v792_v0  ;;  %v875_v22 = vld [vmem:[#allocation10] sm:$0xff]  ;;  %v645_v61 = vld [vmem:[#allocation8 + $0x38] sm:$0xff]   ;;  %v646_v62 = vld [vmem:[#allocation8 + $0x30] sm:$0xff]   ;;  %p764_p0 = por %p763_p13, %p762_p12 }
  0x43   :  { %562 = vmatpush3.bf16.msra.mxu0 %v630_v2  ;;  %v108_v23 = vrot.slane %v875_v22, %v107_v21  ;;  %v647_v63 = vld [vmem:[#allocation8 + $0x28] sm:$0xff]   ;;  %v648_v1 = vld [vmem:[#allocation8 + $0x20] sm:$0xff]   ;;  %v649_v2 = vld [vmem:[#allocation8 + $0x18] sm:$0xff]  }
  0x44   :  { %563 = vmatprep.subr.bf16.mxu0 %v792_v0  ;;  %p765_p1 = pnand %p764_p0, %p758_p11 }
  0x45   :  { %582 = vmatpush3.bf16.msra.mxu1 %v638_v12 }
  0x46   :  { %583 = vmatprep.subr.bf16.mxu1 %v792_v0 }
  0x47   :  { %564 = vmatpush3.bf16.msra.mxu0 %v631_v3  ;;  %v650_v3 = vld [vmem:[#allocation8 + $0x10] sm:$0xff]  }
  0x48   :  { %565 = vmatprep.subr.bf16.mxu0 %v792_v0 }
  0x49   :  { %584 = vmatpush3.bf16.msra.mxu1 %v639_v13 }
  0x4a   :  { %585 = vmatprep.subr.bf16.mxu1 %v792_v0 }
  0x4b   :  { %566 = vmatpush3.bf16.msra.mxu0 %v632_v4  ;;  %v651_v4 = vld [vmem:[#allocation8 + $0x8] sm:$0xff]  }
  0x4c   :  { %567 = vmatprep.subr.bf16.mxu0 %v792_v0 }
  0x4d   :  { %586 = vmatpush3.bf16.msra.mxu1 %v640_v14 }
  0x4e   :  { %587 = vmatprep.subr.bf16.mxu1 %v792_v0 }
  0x4f   :  { %568 = vmatpush3.bf16.msra.mxu0 %v633_v5  ;;  %v652_v5 = vld [vmem:[#allocation8] sm:$0xff]  }
  0x50   :  { %569 = vmatprep.subr.bf16.mxu0 %v792_v0 }
  0x51   :  { %588 = vmatpush3.bf16.msra.mxu1 %v641_v15 }
  0x52   :  { %589 = vmatprep.subr.bf16.mxu1 %v792_v0 }
  0x53   :  { %570 = vmatpush3.bf16.msra.mxu0 %v634_v6  ;;  %v253_v6 = vsub.s32 3, %v872_v20 }
  0x54   :  { %571 = vmatprep.subr.bf16.mxu0 %v792_v0 }
  0x55   :  { %590 = vmatpush3.bf16.msra.mxu1 %v642_v16 }
  0x56   :  { %591 = vmatprep.subr.bf16.mxu1 %v792_v0 }
  0x57   :  { %572 = vmatpush3.bf16.msra.mxu0 %v635_v7  ;;  %v254_v7 = vrot.slane %v875_v22, %v253_v6 }
  0x58   :  { %573 = vmatprep.subr.bf16.mxu0 %v792_v0 }
  0x59   :  { %592 = vmatpush3.bf16.msra.mxu1 %v643_v17 }
  0x5a   :  { %593 = vmatprep.subr.bf16.mxu1 %v792_v0 }
  0x5b   :  { %574 = vmatpush3.bf16.msra.mxu0 %v636_v8 }
  0x5c   :  { %599 = vmatprep.subr.bf16.mxu0 %v792_v0 }
  0x5d   :  { %594 = vmatpush3.bf16.msra.mxu1 %v644_v18 }
  0x5e   :  { %576 = vmatmul.mubr.bf16.vlgmr.msra.gmra.mxu0 %v88_v10 }
  0x5f   :  { %615 = vmatprep.mubr.msk.bf16.mxu0 %vm793_vm0, %v792_v0  ;;  %600 = vmatpush3.bf16.msra.mxu0 %v645_v61 }
  0x60   :  { %601 = vmatprep.subr.bf16.mxu0 %v792_v0 }
  0x63   :  { %602 = vmatpush3.bf16.msra.mxu0 %v646_v62 }
  0x64   :  { %603 = vmatprep.subr.bf16.mxu0 %v792_v0 }
  0x67   :  { %604 = vmatpush3.bf16.msra.mxu0 %v647_v63 }
  0x68   :  { %605 = vmatprep.subr.bf16.mxu0 %v792_v0 }
  0x6b   :  { %606 = vmatpush3.bf16.msra.mxu0 %v648_v1 }
  0x6c   :  { %607 = vmatprep.subr.bf16.mxu0 %v792_v0 }
  0x6f   :  { %608 = vmatpush3.bf16.msra.mxu0 %v649_v2 }
  0x70   :  { %609 = vmatprep.subr.bf16.mxu0 %v792_v0 }
  0x73   :  { %610 = vmatpush3.bf16.msra.mxu0 %v650_v3 }
  0x74   :  { %611 = vmatprep.subr.bf16.mxu0 %v792_v0 }
  0x77   :  { %612 = vmatpush3.bf16.msra.mxu0 %v651_v4 }
  0x78   :  { %613 = vmatprep.subr.bf16.mxu0 %v792_v0 }
  0x7b   :  { %614 = vmatpush3.bf16.msra.mxu0 %v652_v5 }
 0x11e   :  { %v191_v24 = vpop.f32.mrf.mxu0 }
 0x11f   :  { %v192_v25 = vadd.f32 %v191_v24, %v108_v23 }
 0x120   :  { %v577_v26 = vpop.f32.mrf.mxu0 }
 0x121   :  { %v197_v27 = vmax.f32 %v192_v25, 0.0 }
 0x122   :  { %v194_v28 = vpop.f32.mrf.mxu0 }
 0x123   :  { %v198_v29 = vrot.slane %v197_v27, 4  ;;  %v205_v30 = vmul.f32 %v197_v27, %v197_v27 }
 0x124   :  { %v578_v31 = vpop.f32.mrf.mxu0 }
 0x125   :  { %v199_v32 = vadd.f32 %v198_v29, %v197_v27  ;;  %v206_v33 = vrot.slane %v205_v30, 4 }
 0x127   :  { %v200_v34 = vrot.slane %v199_v32, 2  ;;  %v207_v35 = vadd.f32 %v206_v33, %v205_v30 }
 0x129   :  { %v201_v36 = vadd.f32 %v200_v34, %v199_v32  ;;  %v208_v37 = vrot.slane %v207_v35, 2 }
 0x12b   :  { %v202_v38 = vrot.slane %v201_v36, 1  ;;  %v209_v39 = vadd.f32 %v208_v37, %v207_v35  ;;  %v373_v37 = vsub.s32 4, %v872_v20 }
 0x12d   :  { %v203_v40 = vadd.f32 %v202_v38, %v201_v36  ;;  %v210_v41 = vrot.slane %v209_v39, 1 }
 0x12f   :  { %v204_v42 = vmul.f32 0.125, %v203_v40  ;;  %v211_v43 = vadd.f32 %v210_v41, %v209_v39  ;;  %v378_v41 = vsub.s32 5, %v872_v20 }
 0x131   :  { %v212_v44 = vmul.f32 0.125, %v211_v43  ;;  %v213_v45 = vmul.f32 %v204_v42, %v204_v42 }
 0x133   :  { %v214_v46 = vsub.f32 %v212_v44, %v213_v45 }
 0x135   :  { %v215_v47 = vmax.f32 %v214_v46, 0.0 }
 0x137   :  { %v216_v48 = vadd.f32 1e-05, %v215_v47  ;;  %v400_v47 = vsub.s32 6, %v872_v20 }
 0x139   :  { %653 = vrsqrt.f32 %v216_v48  ;;  %v401_v48 = vrot.slane %v875_v22, %v400_v47 }
 0x146   :  { %v654_v49 = vpop.eup %653 }
 0x147   :  { %v218_v50 = vmul.f32 %v654_v49, %v875_v22 }
 0x149   :  { %v219_v52 = vmul.f32 %v218_v50, %v204_v42  ;;  %v227_v54 = vrot.slane %v218_v50, %v226_v51 }
 0x14b   :  { %v221_v53 = vrot.slane %v219_v52, 7  ;;  %v228_v57 = vmul.f32 %v227_v54, %v197_v27 }
 0x14d   :  { %v223_v56 = vsub.f32 %v875_v22, %v221_v53 }
 0x14f   :  { %v232_v58 = vrot.slane %v223_v56, %v231_v55 }
 0x151   :  { %v233_v59 = vadd.f32 %v232_v58, %v228_v57 }
 0x153   :  { %v234_v60 = vpack.c.bf16 %v233_v59, %v233_v59 }
 0x155   :  { %596 = vmatmul.mubr.bf16.vlgmr.msra.gmra.mxu1 %v234_v60 }
 0x215   :  { %v337_v8 = vpop.f32.mrf.mxu1 }
 0x216   :  { %v338_v9 = vadd.f32 %v337_v8, %v254_v7 }
 0x217   :  { %v597_v10 = vpop.f32.mrf.mxu1 }
 0x218   :  { %v343_v11 = vmax.f32 %v338_v9, 0.0 }
 0x219   :  { %v340_v12 = vpop.f32.mrf.mxu1 }
 0x21a   :  { %v344_v13 = vadd.f32 %v343_v11, %v233_v59 }
 0x21b   :  { %v598_v14 = vpop.f32.mrf.mxu1 }
 0x21c   :  { %v345_v15 = vrot.slane %v344_v13, 4  ;;  %v352_v16 = vmul.f32 %v344_v13, %v344_v13 }
 0x21e   :  { %v346_v17 = vadd.f32 %v345_v15, %v344_v13  ;;  %v353_v18 = vrot.slane %v352_v16, 4 }
 0x220   :  { %v347_v19 = vrot.slane %v346_v17, 2  ;;  %v354_v21 = vadd.f32 %v353_v18, %v352_v16 }
 0x222   :  { %v348_v23 = vadd.f32 %v347_v19, %v346_v17  ;;  %v355_v0 = vrot.slane %v354_v21, 2 }
 0x224   :  { %v349_v24 = vrot.slane %v348_v23, 1  ;;  %v356_v25 = vadd.f32 %v355_v0, %v354_v21 }
 0x226   :  { %v350_v26 = vadd.f32 %v349_v24, %v348_v23  ;;  %v357_v27 = vrot.slane %v356_v25, 1 }
 0x228   :  { %v351_v28 = vmul.f32 0.125, %v350_v26  ;;  %v358_v29 = vadd.f32 %v357_v27, %v356_v25 }
 0x22a   :  { %v359_v30 = vmul.f32 0.125, %v358_v29  ;;  %v360_v31 = vmul.f32 %v351_v28, %v351_v28 }
 0x22c   :  { %v361_v32 = vsub.f32 %v359_v30, %v360_v31 }
 0x22e   :  { %v362_v33 = vmax.f32 %v361_v32, 0.0 }
 0x230   :  { %v363_v34 = vadd.f32 1e-05, %v362_v33 }
 0x232   :  { %655 = vrsqrt.f32 %v363_v34 }
 0x23f   :  { %v656_v35 = vpop.eup %655 }
 0x240   :  { %v365_v36 = vmul.f32 %v656_v35, %v875_v22 }
 0x242   :  { %v366_v38 = vmul.f32 %v365_v36, %v351_v28  ;;  %v374_v40 = vrot.slane %v365_v36, %v373_v37 }
 0x244   :  { %v368_v39 = vrot.slane %v366_v38, 7  ;;  %v375_v43 = vmul.f32 %v374_v40, %v344_v13 }
 0x246   :  { %v370_v42 = vsub.f32 %v875_v22, %v368_v39 }
 0x248   :  { %v379_v44 = vrot.slane %v370_v42, %v378_v41 }
 0x24a   :  { %v380_v45 = vadd.f32 %v379_v44, %v375_v43 }
 0x24c   :  { %v381_v46 = vpack.c.bf16 %v380_v45, %v380_v45 }
 0x24e   :  { %616 = vmatmul.mubr.bf16.vlgmr.msra.gmra.mxu0 %v381_v46 }
 0x30e   :  { %v484_v49 = vpop.f32.mrf.mxu0 }
 0x30f   :  { %v485_v50 = vadd.f32 %v484_v49, %v401_v48 }
 0x310   :  { %v617_v51 = vpop.f32.mrf.mxu0 }
 0x311   :  { %490 = vst [vmem:[#allocation11] sm:$0xff] %v485_v50 }
 0x312   :  { %v487_v52 = vpop.f32.mrf.mxu0 }
 0x313   :  { %768 = shalt.err (!%p765_p1)
}
 0x314   :  { %500 = dma.vmem_to_hbm [thread:$0]  %s498_s4, 128, %s905_s5, [#allocation4]   ;;  %v618_v20 = vpop.f32.mrf.mxu0 }
 0x315   :  { %783 = dma.done.wait [#allocation4], 128  }
 0x316   :  { %784 = vsyncadd [#allocation4], 4294967168 }
 0x317   :  { %504 = vsyncpa [#allocation3], 1 }
 0x318   :  { %505 = vsyncpa [#allocation6], 1 }
 0x319   :  { %506 = vsyncpa [#allocation9], 1 }
 0x31a   :  { %507 = vsyncpa [#allocation4], 1 }

</bundles_post_ra>
